<compile_context>
chip_gen: v7x
topology: tpu7x:2x2x1
jax: 0.10.0
libtpu: 0.0.40
codegen_flags: <defaults>
</compile_context>

<pallas_src>
import jax
import jax.numpy as jnp
import numpy as np
from jax.experimental import pallas as pl
from jax.experimental.pallas import tpu as pltpu

# ----------------------------- configuration ------------------------------
B = 2            # batch
S = 8            # sequence length
BS = B * S       # total tokens
H = 32           # backbone hidden_size
F = 128          # FFN intermediate size
NI = 8           # num_intent_labels
NS = 16          # num_slot_labels
V = 64           # vocab size (synthetic)
IGNORE_INDEX = -100
SLOT_COEF = 2.0

PARAM_DEFS = [
    ("lne_g", (1, H)), ("lne_b", (1, H)),
    ("wq", (H, H)), ("bq", (1, H)),
    ("wk", (H, H)), ("bk", (1, H)),
    ("wv", (H, H)), ("bv", (1, H)),
    ("wo", (H, H)), ("bo", (1, H)),
    ("ln1_g", (1, H)), ("ln1_b", (1, H)),
    ("wf1", (H, F)), ("bf1", (1, F)),
    ("wf2", (F, H)), ("bf2", (1, H)),
    ("ln2_g", (1, H)), ("ln2_b", (1, H)),
    ("wp", (H, H)), ("bp", (1, H)),
    ("wi", (H, NI)), ("bi", (1, NI)),
    ("ws", (H, NS)), ("bs", (1, NS)),
]
NP_ = len(PARAM_DEFS)
_WIDTH = {name: shape[1] for name, shape in PARAM_DEFS}

# --------------------- 128-lane-aligned slab layouts -----------------------
# Every fused group starts on a 128-lane boundary so in-kernel slices are
# aligned sub-tile views.
W_GROUPS = [["wq", "wk", "wv"], ["wo"], ["wf1"], ["ws", "wp"], ["wi"]]
B_GROUPS = [["bq", "bk", "bv"], ["bo"], ["bf1"], ["bs", "bp"], ["bi"]]


def _group_pack(groups):
    off, cursor = {}, 0
    for names in groups:
        pos = cursor
        for n in names:
            off[n] = (pos, pos + _WIDTH[n])
            pos += _WIDTH[n]
        cursor = ((pos + 127) // 128) * 128
    return off, cursor


W_OFF, W_TOT = _group_pack(W_GROUPS)     # -> 640 lanes, bf16
B_OFF, B_TOT = _group_pack(B_GROUPS)     # -> 640 lanes, f32 (row 0 of bslab)
# LayerNorm params + bf2 live on their own sublane rows (lanes 0:H -> aligned)
LN_ROW = {"lne_g": 1, "lne_b": 2, "ln1_g": 3, "ln1_b": 4,
          "bf2": 5, "ln2_g": 6, "ln2_b": 7}

# input data slab (BS, DATA_W) f32 lane layout
DATA_W = 256
X_OFF = 0                      # lanes   0:32   token embeddings
BIAS_OFF = 128                 # lanes 128:144  additive attention bias
LAB_LANE = BIAS_OFF + BS       # lane  144      slot labels (as f32)
MASK_LANE = LAB_LANE + 1       # lane  145      attention mask
ILAB_LANE = MASK_LANE + 1      # lane  146      intent labels (rows 0:B)

# output slab (BS, OUT_W) f32: lanes 0:NS slot logits | NS:NS+NI intent logits
# (rows 0:B) | lane NS+NI row 0 total loss
OUT_W = 128


def _layernorm(v, g, b):
    # one-pass LN: mean and second moment are independent lane reductions
    mu = jnp.mean(v, axis=-1, keepdims=True)
    m2 = jnp.mean(v * v, axis=-1, keepdims=True)
    var = m2 - mu * mu
    return (v - mu) * jax.lax.rsqrt(var + 1e-12) * g + b


def _wc(Wm, a, b=None):
    lo = W_OFF[a][0]
    hi = W_OFF[a if b is None else b][1]
    return Wm[:, lo:hi]


def _bc(Bm, a, b=None):
    lo = B_OFF[a][0]
    hi = B_OFF[a if b is None else b][1]
    return Bm[0:1, lo:hi]


def _lnr(Bm, name):
    r = LN_ROW[name]
    return Bm[r:r + 1, 0:H]


def _bf16(x):
    return x.astype(jnp.bfloat16)


# ------------------------------- the kernel -------------------------------
def _joint_kernel(data_ref, w_ref, wf2_ref, b_ref, out_ref):
    Wm = w_ref[...]            # (H, W_TOT)   bf16 packed H-input weights
    Wf2 = wf2_ref[...]         # (F, H)       bf16
    Bm = b_ref[...]            # (8, B_TOT)   f32  packed biases / LN params

    data = data_ref[...]       # (BS, DATA_W) f32 packed activations / labels / mask
    x = data[:, X_OFF:X_OFF + H]
    bias = data[:, BIAS_OFF:BIAS_OFF + BS]       # block-diag + padding additive mask
    labels = data[:, LAB_LANE:LAB_LANE + 1].astype(jnp.int32)
    maskc = data[:, MASK_LANE:MASK_LANE + 1]
    ilab = data[0:B, ILAB_LANE:ILAB_LANE + 1].astype(jnp.int32)

    # ---- synthetic single-layer BERT encoder over all B*S tokens ----
    h = _layernorm(x, _lnr(Bm, "lne_g"), _lnr(Bm, "lne_b"))

    # fused QKV: one (BS,H)@(H,3H) bf16 matmul, f32 accumulation
    qkv = jnp.dot(_bf16(h), _wc(Wm, "wq", "wv"),
                  preferred_element_type=jnp.float32) + _bc(Bm, "bq", "bv")
    q, k, v = qkv[:, 0:H], qkv[:, H:2 * H], qkv[:, 2 * H:3 * H]

    # flat attention; the block-diagonal mask keeps samples independent.  A fully
    # masked sample would give a uniform softmax row (finite after max-subtract),
    # whose contribution is masked out of the losses anyway.
    scores = jax.lax.dot_general(
        _bf16(q), _bf16(k), (((1,), (1,)), ((), ())),
        preferred_element_type=jnp.float32) * (1.0 / (H ** 0.5)) + bias
    scores = scores - jnp.max(scores, axis=-1, keepdims=True)
    p = jnp.exp(scores)
    p = p * pl.reciprocal(jnp.sum(p, axis=-1, keepdims=True), approx=True)
    ctx = jnp.dot(_bf16(p), _bf16(v), preferred_element_type=jnp.float32)   # (BS, H)

    attn = jnp.dot(_bf16(ctx), _wc(Wm, "wo"),
                   preferred_element_type=jnp.float32) + _bc(Bm, "bo")
    h1 = _layernorm(h + attn, _lnr(Bm, "ln1_g"), _lnr(Bm, "ln1_b"))

    ff = jnp.dot(_bf16(h1), _wc(Wm, "wf1"),
                 preferred_element_type=jnp.float32) + _bc(Bm, "bf1")
    ff = jax.nn.gelu(ff, approximate=True)   # TODO(synk): HF BERT uses exact erf GELU
    ff = jnp.dot(_bf16(ff), Wf2, preferred_element_type=jnp.float32) + _lnr(Bm, "bf2")
    seq = _layernorm(h1 + ff, _lnr(Bm, "ln2_g"), _lnr(Bm, "ln2_b"))         # (BS, H)

    # ---- fused heads: [slot logits | pooler pre-activation] in one matmul ----
    heads = jnp.dot(_bf16(seq), _wc(Wm, "ws", "wp"),
                    preferred_element_type=jnp.float32) + _bc(Bm, "bs", "bp")
    slog = heads[:, 0:NS]                    # (BS, NS) slot logits
    pooled_pre = heads[:, NS:NS + H]         # (BS, H)  token@Wp + bp for every token

    # CLS rows via static row slices (no selection matmul on the critical path)
    cls = jnp.concatenate([pooled_pre[b * S:b * S + 1, :] for b in range(B)], axis=0)
    pooled = jnp.tanh(cls)                                                   # (B, H)
    ilog = jnp.dot(_bf16(pooled), _wc(Wm, "wi"),
                   preferred_element_type=jnp.float32) + _bc(Bm, "bi")       # (B, NI)

    # ---- intent cross-entropy (mean over batch) ----
    imax = jnp.max(ilog, axis=-1, keepdims=True)
    ilse = jnp.log(jnp.sum(jnp.exp(ilog - imax), axis=-1, keepdims=True)) + imax
    ioh = (jax.lax.broadcasted_iota(jnp.int32, (B, NI), 1) == ilab).astype(jnp.float32)
    ipick = jnp.sum(ilog * ioh, axis=-1, keepdims=True)
    intent_loss = jnp.sum(ilse - ipick, keepdims=True) * (1.0 / B)           # (1, 1)

    # ---- slot cross-entropy over active tokens (mask==1 and label != ignore) ----
    smax = jnp.max(slog, axis=-1, keepdims=True)
    slse = jnp.log(jnp.sum(jnp.exp(slog - smax), axis=-1, keepdims=True)) + smax
    soh = (jax.lax.broadcasted_iota(jnp.int32, (BS, NS), 1) == labels).astype(jnp.float32)
    spick = jnp.sum(slog * soh, axis=-1, keepdims=True)
    active = maskc * (labels != IGNORE_INDEX).astype(jnp.float32)
    ssum = jnp.sum((slse - spick) * active, keepdims=True)
    scnt = jnp.maximum(jnp.sum(active, keepdims=True), 1.0)                  # guard /0
    slot_loss = ssum / scnt
    total = intent_loss + SLOT_COEF * slot_loss                              # (1, 1)

    # ---- single lane-dense (BS, 128) output slab -> one dense output DMA ----
    out_ref[...] = jnp.zeros((BS, OUT_W), jnp.float32)
    out_ref[:, 0:NS] = slog
    out_ref[0:B, NS:NS + NI] = ilog
    out_ref[0:1, NS + NI:NS + NI + 1] = total


# ------------------------------- wrappers -----------------------------------
def pack_params(params):
    """Pack the 24 parameter tensors into 3 slabs.  Call ONCE per checkpoint
    (outside the per-step jit) — the packed slabs are reused every forward."""
    wslab = jnp.zeros((H, W_TOT), jnp.float32)
    for name, (lo, hi) in W_OFF.items():
        wslab = wslab.at[:, lo:hi].set(params[name])
    bslab = jnp.zeros((8, B_TOT), jnp.float32)
    for name, (lo, hi) in B_OFF.items():
        bslab = bslab.at[0:1, lo:hi].set(params[name])
    for name, row in LN_ROW.items():
        bslab = bslab.at[row:row + 1, 0:H].set(params[name])
    return wslab.astype(jnp.bfloat16), params["wf2"].astype(jnp.bfloat16), bslab


@jax.jit
def joint_forward(wslab, wf2, bslab, emb_params, input_ids, intent_label_ids,
                  slot_labels_ids, attention_mask):
    # glue (plain JAX): embedding gather/sum, mask/bias building, input-slab packing
    x_emb = (emb_params["word_emb"][input_ids]
             + emb_params["pos_emb"][None, :S, :]
             + emb_params["type_emb"][None, 0:1, :]).astype(jnp.float32)
    x_flat = x_emb.reshape(BS, H)

    mask_flat = attention_mask.reshape(BS)
    tok = jnp.arange(BS, dtype=jnp.int32)
    same_sample = (tok[:, None] // S) == (tok[None, :] // S)
    key_active = mask_flat[None, :] == 1
    attn_bias = jnp.where(same_sample & key_active, 0.0, -1e9).astype(jnp.float32)

    ilab_col = jnp.zeros((BS,), jnp.float32).at[0:B].set(
        intent_label_ids.astype(jnp.float32))

    data = jnp.zeros((BS, DATA_W), jnp.float32)
    data = data.at[:, X_OFF:X_OFF + H].set(x_flat)
    data = data.at[:, BIAS_OFF:BIAS_OFF + BS].set(attn_bias)
    data = data.at[:, LAB_LANE].set(slot_labels_ids.reshape(BS).astype(jnp.float32))
    data = data.at[:, MASK_LANE].set(mask_flat.astype(jnp.float32))
    data = data.at[:, ILAB_LANE].set(ilab_col)

    vmem = pl.BlockSpec(memory_space=pltpu.MemorySpace.VMEM)
    out = pl.pallas_call(
        _joint_kernel,
        out_shape=jax.ShapeDtypeStruct((BS, OUT_W), jnp.float32),
        in_specs=[vmem, vmem, vmem, vmem],
        out_specs=vmem,
    )(data, wslab, wf2, bslab)

    slot_logits = out[:, 0:NS].reshape(B, S, NS)
    intent_logits = out[0:B, NS:NS + NI]
    total_loss = out[0, NS + NI]
    return total_loss, intent_logits, slot_logits


# --------------------------- pure-JAX reference -----------------------------
def reference_forward(params, emb_params, input_ids, intent_label_ids, slot_labels_ids,
                      attention_mask):
    x = (emb_params["word_emb"][input_ids]
         + emb_params["pos_emb"][None, :S, :]
         + emb_params["type_emb"][None, 0:1, :]).astype(jnp.float32)
    m = attention_mask.astype(jnp.float32)
    h = _layernorm(x, params["lne_g"], params["lne_b"])
    q = h @ params["wq"] + params["bq"]
    k = h @ params["wk"] + params["bk"]
    v = h @ params["wv"] + params["bv"]
    scores = jnp.einsum("bqh,bkh->bqk", q, k) / (H ** 0.5)
    scores = scores + (1.0 - m)[:, None, :] * (-1e9)
    scores = scores - jnp.max(scores, axis=-1, keepdims=True)
    p = jnp.exp(scores)
    p = p / jnp.sum(p, axis=-1, keepdims=True)
    ctx = jnp.einsum("bqk,bkh->bqh", p, v)
    attn = ctx @ params["wo"] + params["bo"]
    h1 = _layernorm(h + attn, params["ln1_g"], params["ln1_b"])
    ff = jax.nn.gelu(h1 @ params["wf1"] + params["bf1"], approximate=True)
    ff = ff @ params["wf2"] + params["bf2"]
    seq_out = _layernorm(h1 + ff, params["ln2_g"], params["ln2_b"])
    pooled = jnp.tanh(seq_out[:, 0, :] @ params["wp"] + params["bp"])
    ilog = pooled @ params["wi"] + params["bi"]
    slog = seq_out @ params["ws"] + params["bs"]

    ilse = jax.nn.logsumexp(ilog, axis=-1)
    ipick = jnp.take_along_axis(ilog, intent_label_ids[:, None].astype(jnp.int32), axis=-1)[:, 0]
    intent_loss = jnp.mean(ilse - ipick)

    flat_log = slog.reshape(-1, NS)
    flat_lab = slot_labels_ids.reshape(-1)
    flat_m = attention_mask.reshape(-1)
    active = (flat_m == 1) & (flat_lab != IGNORE_INDEX)
    slse = jax.nn.logsumexp(flat_log, axis=-1)
    safe_lab = jnp.where(flat_lab < 0, 0, flat_lab).astype(jnp.int32)
    spick = jnp.take_along_axis(flat_log, safe_lab[:, None], axis=-1)[:, 0]
    tok = slse - spick
    slot_loss = jnp.sum(jnp.where(active, tok, 0.0)) / jnp.sum(active.astype(jnp.float32))
    return intent_loss + slot_loss * SLOT_COEF, ilog, slog


# ---------------------------------- main ------------------------------------
if __name__ == "__main__":
    key = jax.random.PRNGKey(0)
    n_keys = NP_ + 8
    keys = list(jax.random.split(key, n_keys))

    params = {}
    for i, (name, shape) in enumerate(PARAM_DEFS):
        if name.endswith("_g"):
            params[name] = jnp.ones(shape, jnp.float32)
        elif name.startswith("ln") and name.endswith("_b"):
            params[name] = jnp.zeros(shape, jnp.float32)
        elif name.startswith("w"):
            params[name] = 0.05 * jax.random.normal(keys[i], shape, jnp.float32)
        else:  # linear biases
            params[name] = 0.02 * jax.random.normal(keys[i], shape, jnp.float32)

    emb_params = {
        "word_emb": 0.05 * jax.random.normal(keys[NP_ + 0], (V, H), jnp.float32),
        "pos_emb": 0.05 * jax.random.normal(keys[NP_ + 1], (S, H), jnp.float32),
        "type_emb": 0.05 * jax.random.normal(keys[NP_ + 2], (2, H), jnp.float32),
    }

    input_ids = jax.random.randint(keys[NP_ + 3], (B, S), 0, V, dtype=jnp.int32)
    lengths = jnp.array([S, 5], jnp.int32)
    attention_mask = (jnp.arange(S)[None, :] < lengths[:, None]).astype(jnp.int32)
    intent_label_ids = jax.random.randint(keys[NP_ + 4], (B,), 0, NI, dtype=jnp.int32)
    slot_labels_ids = jax.random.randint(keys[NP_ + 5], (B, S), 0, NS, dtype=jnp.int32)
    slot_labels_ids = jnp.where(attention_mask == 0, IGNORE_INDEX, slot_labels_ids)
    slot_labels_ids = slot_labels_ids.at[0, 1].set(IGNORE_INDEX)  # exercise ignore_index

    # pack parameter slabs ONCE (not inside the per-step jit)
    wslab, wf2_bf16, bslab = pack_params(params)
    jax.block_until_ready((wslab, wf2_bf16, bslab))

    total, intent_logits, slot_logits = joint_forward(
        wslab, wf2_bf16, bslab, emb_params, input_ids, intent_label_ids,
        slot_labels_ids, attention_mask)
    jax.block_until_ready((total, intent_logits, slot_logits))

    ref_total, ref_ilog, ref_slog = reference_forward(
        params, emb_params, input_ids, intent_label_ids, slot_labels_ids, attention_mask)

    assert intent_logits.shape == (B, NI)
    assert slot_logits.shape == (B, S, NS)
    assert np.allclose(np.asarray(total), np.asarray(ref_total), rtol=2e-2, atol=2e-2)
    assert np.allclose(np.asarray(intent_logits), np.asarray(ref_ilog), rtol=2e-2, atol=2e-2)
    assert np.allclose(np.asarray(slot_logits), np.asarray(ref_slog), rtol=2e-2, atol=2e-2)
    assert np.isfinite(np.asarray(total)).all()

    print("KERNEL_OK")
</pallas_src>

<mosaic_0001>
module attributes {stable_mosaic.version = 11 : i64} {
  func.func @_joint_kernel(%arg0: memref<16x256xf32, #tpu.memory_space<vmem>>, %arg1: memref<32x640xbf16, #tpu.memory_space<vmem>>, %arg2: memref<128x32xbf16, #tpu.memory_space<vmem>>, %arg3: memref<8x640xf32, #tpu.memory_space<vmem>>, %arg4: memref<16x128xf32, #tpu.memory_space<vmem>>) attributes {dimension_semantics = [], scalar_prefetch = 0 : i64, scratch_operands = 0 : i64, tpu.core_type = #tpu.core_type<tc>} {
    %c0 = arith.constant 0 : index
    %c0_0 = arith.constant 0 : index
    %0 = vector.load %arg1[%c0, %c0_0] : memref<32x640xbf16, #tpu.memory_space<vmem>>, vector<32x640xbf16>
    %c0_1 = arith.constant 0 : index
    %c0_2 = arith.constant 0 : index
    %1 = vector.load %arg2[%c0_1, %c0_2] : memref<128x32xbf16, #tpu.memory_space<vmem>>, vector<128x32xbf16>
    %c0_3 = arith.constant 0 : index
    %c0_4 = arith.constant 0 : index
    %2 = vector.load %arg3[%c0_3, %c0_4] : memref<8x640xf32, #tpu.memory_space<vmem>>, vector<8x640xf32>
    %c0_5 = arith.constant 0 : index
    %c0_6 = arith.constant 0 : index
    %3 = vector.load %arg0[%c0_5, %c0_6] : memref<16x256xf32, #tpu.memory_space<vmem>>, vector<16x256xf32>
    %4 = vector.extract_strided_slice %3 {offsets = [0, 0], sizes = [16, 32], strides = [1, 1]} : vector<16x256xf32> to vector<16x32xf32>
    %5 = vector.extract_strided_slice %3 {offsets = [0, 128], sizes = [16, 16], strides = [1, 1]} : vector<16x256xf32> to vector<16x16xf32>
    %6 = vector.extract_strided_slice %3 {offsets = [0, 144], sizes = [16, 1], strides = [1, 1]} : vector<16x256xf32> to vector<16x1xf32>
    %7 = arith.fptosi %6 : vector<16x1xf32> to vector<16x1xi32>
    %8 = vector.extract_strided_slice %3 {offsets = [0, 145], sizes = [16, 1], strides = [1, 1]} : vector<16x256xf32> to vector<16x1xf32>
    %9 = vector.extract_strided_slice %3 {offsets = [0, 146], sizes = [2, 1], strides = [1, 1]} : vector<16x256xf32> to vector<2x1xf32>
    %10 = arith.fptosi %9 : vector<2x1xf32> to vector<2x1xi32>
    %11 = vector.extract_strided_slice %2 {offsets = [1, 0], sizes = [1, 32], strides = [1, 1]} : vector<8x640xf32> to vector<1x32xf32>
    %12 = vector.extract_strided_slice %2 {offsets = [2, 0], sizes = [1, 32], strides = [1, 1]} : vector<8x640xf32> to vector<1x32xf32>
    %cst = arith.constant dense<0.000000e+00> : vector<16xf32>
    %13 = vector.multi_reduction <add>, %4, %cst [1] : vector<16x32xf32> to vector<16xf32>
    %14 = vector.shape_cast %13 : vector<16xf32> to vector<16x1xf32>
    %cst_7 = arith.constant 3.200000e+01 : f32
    %15 = vector.broadcast %cst_7 : f32 to vector<16x1xf32>
    %16 = arith.divf %14, %15 : vector<16x1xf32>
    %17 = arith.mulf %4, %4 : vector<16x32xf32>
    %cst_8 = arith.constant dense<0.000000e+00> : vector<16xf32>
    %18 = vector.multi_reduction <add>, %17, %cst_8 [1] : vector<16x32xf32> to vector<16xf32>
    %19 = vector.shape_cast %18 : vector<16xf32> to vector<16x1xf32>
    %cst_9 = arith.constant 3.200000e+01 : f32
    %20 = vector.broadcast %cst_9 : f32 to vector<16x1xf32>
    %21 = arith.divf %19, %20 : vector<16x1xf32>
    %22 = arith.mulf %16, %16 : vector<16x1xf32>
    %23 = arith.subf %21, %22 : vector<16x1xf32>
    %24 = vector.broadcast %16 : vector<16x1xf32> to vector<16x32xf32>
    %25 = arith.subf %4, %24 : vector<16x32xf32>
    %cst_10 = arith.constant 9.99999996E-13 : f32
    %26 = vector.broadcast %cst_10 : f32 to vector<16x1xf32>
    %27 = arith.addf %23, %26 : vector<16x1xf32>
    %28 = math.rsqrt %27 : vector<16x1xf32>
    %29 = vector.broadcast %28 : vector<16x1xf32> to vector<16x32xf32>
    %30 = arith.mulf %25, %29 : vector<16x32xf32>
    %31 = vector.broadcast %11 : vector<1x32xf32> to vector<16x32xf32>
    %32 = arith.mulf %30, %31 : vector<16x32xf32>
    %33 = vector.broadcast %12 : vector<1x32xf32> to vector<16x32xf32>
    %34 = arith.addf %32, %33 : vector<16x32xf32>
    %35 = arith.truncf %34 : vector<16x32xf32> to vector<16x32xbf16>
    %36 = vector.extract_strided_slice %0 {offsets = [0, 0], sizes = [32, 96], strides = [1, 1]} : vector<32x640xbf16> to vector<32x96xbf16>
    %cst_11 = arith.constant dense<0.000000e+00> : vector<16x96xf32>
    %37 = tpu.matmul %35, %36, %cst_11 {dimension_numbers = #tpu.dot_dimension_numbers<[1], [0], [0], [1], [0, 0, 1, 1], [], []>} : vector<16x32xbf16>, vector<32x96xbf16>, vector<16x96xf32> -> vector<16x96xf32>
    %38 = vector.extract_strided_slice %2 {offsets = [0, 0], sizes = [1, 96], strides = [1, 1]} : vector<8x640xf32> to vector<1x96xf32>
    %39 = vector.broadcast %38 : vector<1x96xf32> to vector<16x96xf32>
    %40 = arith.addf %37, %39 : vector<16x96xf32>
    %41 = vector.extract_strided_slice %40 {offsets = [0, 0], sizes = [16, 32], strides = [1, 1]} : vector<16x96xf32> to vector<16x32xf32>
    %42 = vector.extract_strided_slice %40 {offsets = [0, 32], sizes = [16, 32], strides = [1, 1]} : vector<16x96xf32> to vector<16x32xf32>
    %43 = vector.extract_strided_slice %40 {offsets = [0, 64], sizes = [16, 32], strides = [1, 1]} : vector<16x96xf32> to vector<16x32xf32>
    %44 = arith.truncf %41 : vector<16x32xf32> to vector<16x32xbf16>
    %45 = arith.truncf %42 : vector<16x32xf32> to vector<16x32xbf16>
    %cst_12 = arith.constant dense<0.000000e+00> : vector<16x16xf32>
    %46 = tpu.matmul %44, %45, %cst_12 {dimension_numbers = #tpu.dot_dimension_numbers<[1], [1], [0], [0], [0, 0, 1, 0], [], []>} : vector<16x32xbf16>, vector<16x32xbf16>, vector<16x16xf32> -> vector<16x16xf32>
    %cst_13 = arith.constant 0.176776692 : f32
    %47 = vector.broadcast %cst_13 : f32 to vector<16x16xf32>
    %48 = arith.mulf %46, %47 : vector<16x16xf32>
    %49 = arith.addf %48, %5 : vector<16x16xf32>
    %cst_14 = arith.constant dense<0xFF800000> : vector<16xf32>
    %50 = vector.multi_reduction <maximumf>, %49, %cst_14 [1] : vector<16x16xf32> to vector<16xf32>
    %51 = vector.shape_cast %50 : vector<16xf32> to vector<16x1xf32>
    %52 = vector.broadcast %51 : vector<16x1xf32> to vector<16x16xf32>
    %53 = arith.subf %49, %52 : vector<16x16xf32>
    %54 = math.exp %53 : vector<16x16xf32>
    %cst_15 = arith.constant dense<0.000000e+00> : vector<16xf32>
    %55 = vector.multi_reduction <add>, %54, %cst_15 [1] : vector<16x16xf32> to vector<16xf32>
    %56 = vector.shape_cast %55 : vector<16xf32> to vector<16x1xf32>
    %57 = tpu.reciprocal %56 {approx = true} : vector<16x1xf32> -> vector<16x1xf32>
    %58 = vector.broadcast %57 : vector<16x1xf32> to vector<16x16xf32>
    %59 = arith.mulf %54, %58 : vector<16x16xf32>
    %60 = arith.truncf %59 : vector<16x16xf32> to vector<16x16xbf16>
    %61 = arith.truncf %43 : vector<16x32xf32> to vector<16x32xbf16>
    %cst_16 = arith.constant dense<0.000000e+00> : vector<16x32xf32>
    %62 = tpu.matmul %60, %61, %cst_16 {dimension_numbers = #tpu.dot_dimension_numbers<[1], [0], [0], [1], [0, 0, 1, 1], [], []>} : vector<16x16xbf16>, vector<16x32xbf16>, vector<16x32xf32> -> vector<16x32xf32>
    %63 = arith.truncf %62 : vector<16x32xf32> to vector<16x32xbf16>
    %64 = vector.extract_strided_slice %0 {offsets = [0, 128], sizes = [32, 32], strides = [1, 1]} : vector<32x640xbf16> to vector<32x32xbf16>
    %cst_17 = arith.constant dense<0.000000e+00> : vector<16x32xf32>
    %65 = tpu.matmul %63, %64, %cst_17 {dimension_numbers = #tpu.dot_dimension_numbers<[1], [0], [0], [1], [0, 0, 1, 1], [], []>} : vector<16x32xbf16>, vector<32x32xbf16>, vector<16x32xf32> -> vector<16x32xf32>
    %66 = vector.extract_strided_slice %2 {offsets = [0, 128], sizes = [1, 32], strides = [1, 1]} : vector<8x640xf32> to vector<1x32xf32>
    %67 = vector.broadcast %66 : vector<1x32xf32> to vector<16x32xf32>
    %68 = arith.addf %65, %67 : vector<16x32xf32>
    %69 = arith.addf %34, %68 : vector<16x32xf32>
    %70 = vector.extract_strided_slice %2 {offsets = [3, 0], sizes = [1, 32], strides = [1, 1]} : vector<8x640xf32> to vector<1x32xf32>
    %71 = vector.extract_strided_slice %2 {offsets = [4, 0], sizes = [1, 32], strides = [1, 1]} : vector<8x640xf32> to vector<1x32xf32>
    %cst_18 = arith.constant dense<0.000000e+00> : vector<16xf32>
    %72 = vector.multi_reduction <add>, %69, %cst_18 [1] : vector<16x32xf32> to vector<16xf32>
    %73 = vector.shape_cast %72 : vector<16xf32> to vector<16x1xf32>
    %cst_19 = arith.constant 3.200000e+01 : f32
    %74 = vector.broadcast %cst_19 : f32 to vector<16x1xf32>
    %75 = arith.divf %73, %74 : vector<16x1xf32>
    %76 = arith.mulf %69, %69 : vector<16x32xf32>
    %cst_20 = arith.constant dense<0.000000e+00> : vector<16xf32>
    %77 = vector.multi_reduction <add>, %76, %cst_20 [1] : vector<16x32xf32> to vector<16xf32>
    %78 = vector.shape_cast %77 : vector<16xf32> to vector<16x1xf32>
    %cst_21 = arith.constant 3.200000e+01 : f32
    %79 = vector.broadcast %cst_21 : f32 to vector<16x1xf32>
    %80 = arith.divf %78, %79 : vector<16x1xf32>
    %81 = arith.mulf %75, %75 : vector<16x1xf32>
    %82 = arith.subf %80, %81 : vector<16x1xf32>
    %83 = vector.broadcast %75 : vector<16x1xf32> to vector<16x32xf32>
    %84 = arith.subf %69, %83 : vector<16x32xf32>
    %cst_22 = arith.constant 9.99999996E-13 : f32
    %85 = vector.broadcast %cst_22 : f32 to vector<16x1xf32>
    %86 = arith.addf %82, %85 : vector<16x1xf32>
    %87 = math.rsqrt %86 : vector<16x1xf32>
    %88 = vector.broadcast %87 : vector<16x1xf32> to vector<16x32xf32>
    %89 = arith.mulf %84, %88 : vector<16x32xf32>
    %90 = vector.broadcast %70 : vector<1x32xf32> to vector<16x32xf32>
    %91 = arith.mulf %89, %90 : vector<16x32xf32>
    %92 = vector.broadcast %71 : vector<1x32xf32> to vector<16x32xf32>
    %93 = arith.addf %91, %92 : vector<16x32xf32>
    %94 = arith.truncf %93 : vector<16x32xf32> to vector<16x32xbf16>
    %95 = vector.extract_strided_slice %0 {offsets = [0, 256], sizes = [32, 128], strides = [1, 1]} : vector<32x640xbf16> to vector<32x128xbf16>
    %cst_23 = arith.constant dense<0.000000e+00> : vector<16x128xf32>
    %96 = tpu.matmul %94, %95, %cst_23 {dimension_numbers = #tpu.dot_dimension_numbers<[1], [0], [0], [1], [0, 0, 1, 1], [], []>} : vector<16x32xbf16>, vector<32x128xbf16>, vector<16x128xf32> -> vector<16x128xf32>
    %97 = vector.extract_strided_slice %2 {offsets = [0, 256], sizes = [1, 128], strides = [1, 1]} : vector<8x640xf32> to vector<1x128xf32>
    %98 = vector.broadcast %97 : vector<1x128xf32> to vector<16x128xf32>
    %99 = arith.addf %96, %98 : vector<16x128xf32>
    %100 = arith.mulf %99, %99 : vector<16x128xf32>
    %101 = arith.mulf %99, %100 : vector<16x128xf32>
    %cst_24 = arith.constant 4.471500e-02 : f32
    %102 = vector.broadcast %cst_24 : f32 to vector<16x128xf32>
    %103 = arith.mulf %102, %101 : vector<16x128xf32>
    %104 = arith.addf %99, %103 : vector<16x128xf32>
    %cst_25 = arith.constant 0.797884583 : f32
    %105 = vector.broadcast %cst_25 : f32 to vector<16x128xf32>
    %106 = arith.mulf %105, %104 : vector<16x128xf32>
    %107 = math.tanh %106 : vector<16x128xf32>
    %cst_26 = arith.constant 1.000000e+00 : f32
    %108 = vector.broadcast %cst_26 : f32 to vector<16x128xf32>
    %109 = arith.addf %108, %107 : vector<16x128xf32>
    %cst_27 = arith.constant 5.000000e-01 : f32
    %110 = vector.broadcast %cst_27 : f32 to vector<16x128xf32>
    %111 = arith.mulf %110, %109 : vector<16x128xf32>
    %112 = arith.mulf %99, %111 : vector<16x128xf32>
    %113 = arith.truncf %112 : vector<16x128xf32> to vector<16x128xbf16>
    %cst_28 = arith.constant dense<0.000000e+00> : vector<16x32xf32>
    %114 = tpu.matmul %113, %1, %cst_28 {dimension_numbers = #tpu.dot_dimension_numbers<[1], [0], [0], [1], [0, 0, 1, 1], [], []>} : vector<16x128xbf16>, vector<128x32xbf16>, vector<16x32xf32> -> vector<16x32xf32>
    %115 = vector.extract_strided_slice %2 {offsets = [5, 0], sizes = [1, 32], strides = [1, 1]} : vector<8x640xf32> to vector<1x32xf32>
    %116 = vector.broadcast %115 : vector<1x32xf32> to vector<16x32xf32>
    %117 = arith.addf %114, %116 : vector<16x32xf32>
    %118 = arith.addf %93, %117 : vector<16x32xf32>
    %119 = vector.extract_strided_slice %2 {offsets = [6, 0], sizes = [1, 32], strides = [1, 1]} : vector<8x640xf32> to vector<1x32xf32>
    %120 = vector.extract_strided_slice %2 {offsets = [7, 0], sizes = [1, 32], strides = [1, 1]} : vector<8x640xf32> to vector<1x32xf32>
    %cst_29 = arith.constant dense<0.000000e+00> : vector<16xf32>
    %121 = vector.multi_reduction <add>, %118, %cst_29 [1] : vector<16x32xf32> to vector<16xf32>
    %122 = vector.shape_cast %121 : vector<16xf32> to vector<16x1xf32>
    %cst_30 = arith.constant 3.200000e+01 : f32
    %123 = vector.broadcast %cst_30 : f32 to vector<16x1xf32>
    %124 = arith.divf %122, %123 : vector<16x1xf32>
    %125 = arith.mulf %118, %118 : vector<16x32xf32>
    %cst_31 = arith.constant dense<0.000000e+00> : vector<16xf32>
    %126 = vector.multi_reduction <add>, %125, %cst_31 [1] : vector<16x32xf32> to vector<16xf32>
    %127 = vector.shape_cast %126 : vector<16xf32> to vector<16x1xf32>
    %cst_32 = arith.constant 3.200000e+01 : f32
    %128 = vector.broadcast %cst_32 : f32 to vector<16x1xf32>
    %129 = arith.divf %127, %128 : vector<16x1xf32>
    %130 = arith.mulf %124, %124 : vector<16x1xf32>
    %131 = arith.subf %129, %130 : vector<16x1xf32>
    %132 = vector.broadcast %124 : vector<16x1xf32> to vector<16x32xf32>
    %133 = arith.subf %118, %132 : vector<16x32xf32>
    %cst_33 = arith.constant 9.99999996E-13 : f32
    %134 = vector.broadcast %cst_33 : f32 to vector<16x1xf32>
    %135 = arith.addf %131, %134 : vector<16x1xf32>
    %136 = math.rsqrt %135 : vector<16x1xf32>
    %137 = vector.broadcast %136 : vector<16x1xf32> to vector<16x32xf32>
    %138 = arith.mulf %133, %137 : vector<16x32xf32>
    %139 = vector.broadcast %119 : vector<1x32xf32> to vector<16x32xf32>
    %140 = arith.mulf %138, %139 : vector<16x32xf32>
    %141 = vector.broadcast %120 : vector<1x32xf32> to vector<16x32xf32>
    %142 = arith.addf %140, %141 : vector<16x32xf32>
    %143 = arith.truncf %142 : vector<16x32xf32> to vector<16x32xbf16>
    %144 = vector.extract_strided_slice %0 {offsets = [0, 384], sizes = [32, 48], strides = [1, 1]} : vector<32x640xbf16> to vector<32x48xbf16>
    %cst_34 = arith.constant dense<0.000000e+00> : vector<16x48xf32>
    %145 = tpu.matmul %143, %144, %cst_34 {dimension_numbers = #tpu.dot_dimension_numbers<[1], [0], [0], [1], [0, 0, 1, 1], [], []>} : vector<16x32xbf16>, vector<32x48xbf16>, vector<16x48xf32> -> vector<16x48xf32>
    %146 = vector.extract_strided_slice %2 {offsets = [0, 384], sizes = [1, 48], strides = [1, 1]} : vector<8x640xf32> to vector<1x48xf32>
    %147 = vector.broadcast %146 : vector<1x48xf32> to vector<16x48xf32>
    %148 = arith.addf %145, %147 : vector<16x48xf32>
    %149 = vector.extract_strided_slice %148 {offsets = [0, 0], sizes = [16, 16], strides = [1, 1]} : vector<16x48xf32> to vector<16x16xf32>
    %150 = vector.extract_strided_slice %148 {offsets = [0, 16], sizes = [16, 32], strides = [1, 1]} : vector<16x48xf32> to vector<16x32xf32>
    %151 = vector.extract_strided_slice %150 {offsets = [0, 0], sizes = [1, 32], strides = [1, 1]} : vector<16x32xf32> to vector<1x32xf32>
    %152 = vector.extract_strided_slice %150 {offsets = [8, 0], sizes = [1, 32], strides = [1, 1]} : vector<16x32xf32> to vector<1x32xf32>
    %153 = tpu.concatenate %151, %152 in 0 : vector<1x32xf32>, vector<1x32xf32> -> vector<2x32xf32>
    %154 = math.tanh %153 : vector<2x32xf32>
    %155 = arith.truncf %154 : vector<2x32xf32> to vector<2x32xbf16>
    %156 = vector.extract_strided_slice %0 {offsets = [0, 512], sizes = [32, 8], strides = [1, 1]} : vector<32x640xbf16> to vector<32x8xbf16>
    %cst_35 = arith.constant dense<0.000000e+00> : vector<2x8xf32>
    %157 = tpu.matmul %155, %156, %cst_35 {dimension_numbers = #tpu.dot_dimension_numbers<[1], [0], [0], [1], [0, 0, 1, 1], [], []>} : vector<2x32xbf16>, vector<32x8xbf16>, vector<2x8xf32> -> vector<2x8xf32>
    %158 = vector.extract_strided_slice %2 {offsets = [0, 512], sizes = [1, 8], strides = [1, 1]} : vector<8x640xf32> to vector<1x8xf32>
    %159 = vector.broadcast %158 : vector<1x8xf32> to vector<2x8xf32>
    %160 = arith.addf %157, %159 : vector<2x8xf32>
    %cst_36 = arith.constant dense<0xFF800000> : vector<2xf32>
    %161 = vector.multi_reduction <maximumf>, %160, %cst_36 [1] : vector<2x8xf32> to vector<2xf32>
    %162 = vector.shape_cast %161 : vector<2xf32> to vector<2x1xf32>
    %163 = vector.broadcast %162 : vector<2x1xf32> to vector<2x8xf32>
    %164 = arith.subf %160, %163 : vector<2x8xf32>
    %165 = math.exp %164 : vector<2x8xf32>
    %cst_37 = arith.constant dense<0.000000e+00> : vector<2xf32>
    %166 = vector.multi_reduction <add>, %165, %cst_37 [1] : vector<2x8xf32> to vector<2xf32>
    %167 = vector.shape_cast %166 : vector<2xf32> to vector<2x1xf32>
    %168 = math.log %167 : vector<2x1xf32>
    %169 = arith.addf %168, %162 : vector<2x1xf32>
    %170 = tpu.iota {dimensions = array<i32: 1>} : vector<2x8xi32>
    %171 = vector.broadcast %10 : vector<2x1xi32> to vector<2x8xi32>
    %172 = arith.cmpi eq, %170, %171 : vector<2x8xi32>
    %173 = arith.extui %172 : vector<2x8xi1> to vector<2x8xi32>
    %174 = arith.sitofp %173 : vector<2x8xi32> to vector<2x8xf32>
    %175 = arith.mulf %160, %174 : vector<2x8xf32>
    %cst_38 = arith.constant dense<0.000000e+00> : vector<2xf32>
    %176 = vector.multi_reduction <add>, %175, %cst_38 [1] : vector<2x8xf32> to vector<2xf32>
    %177 = vector.shape_cast %176 : vector<2xf32> to vector<2x1xf32>
    %178 = arith.subf %169, %177 : vector<2x1xf32>
    %179 = vector.shape_cast %178 : vector<2x1xf32> to vector<1x2x1xf32>
    %cst_39 = arith.constant dense<0.000000e+00> : vector<1xf32>
    %180 = vector.multi_reduction <add>, %179, %cst_39 [1, 2] : vector<1x2x1xf32> to vector<1xf32>
    %181 = vector.shape_cast %180 : vector<1xf32> to vector<1x1x1xf32>
    %182 = vector.extract %181[0, 0, 0] : f32 from vector<1x1x1xf32>
    %183 = vector.broadcast %182 : f32 to vector<1x1xf32>
    %cst_40 = arith.constant 5.000000e-01 : f32
    %184 = vector.broadcast %cst_40 : f32 to vector<1x1xf32>
    %185 = arith.mulf %183, %184 : vector<1x1xf32>
    %cst_41 = arith.constant dense<0xFF800000> : vector<16xf32>
    %186 = vector.multi_reduction <maximumf>, %149, %cst_41 [1] : vector<16x16xf32> to vector<16xf32>
    %187 = vector.shape_cast %186 : vector<16xf32> to vector<16x1xf32>
    %188 = vector.broadcast %187 : vector<16x1xf32> to vector<16x16xf32>
    %189 = arith.subf %149, %188 : vector<16x16xf32>
    %190 = math.exp %189 : vector<16x16xf32>
    %cst_42 = arith.constant dense<0.000000e+00> : vector<16xf32>
    %191 = vector.multi_reduction <add>, %190, %cst_42 [1] : vector<16x16xf32> to vector<16xf32>
    %192 = vector.shape_cast %191 : vector<16xf32> to vector<16x1xf32>
    %193 = math.log %192 : vector<16x1xf32>
    %194 = arith.addf %193, %187 : vector<16x1xf32>
    %195 = tpu.iota {dimensions = array<i32: 1>} : vector<16x16xi32>
    %196 = vector.broadcast %7 : vector<16x1xi32> to vector<16x16xi32>
    %197 = arith.cmpi eq, %195, %196 : vector<16x16xi32>
    %198 = arith.extui %197 : vector<16x16xi1> to vector<16x16xi32>
    %199 = arith.sitofp %198 : vector<16x16xi32> to vector<16x16xf32>
    %200 = arith.mulf %149, %199 : vector<16x16xf32>
    %cst_43 = arith.constant dense<0.000000e+00> : vector<16xf32>
    %201 = vector.multi_reduction <add>, %200, %cst_43 [1] : vector<16x16xf32> to vector<16xf32>
    %202 = vector.shape_cast %201 : vector<16xf32> to vector<16x1xf32>
    %c-100_i32 = arith.constant -100 : i32
    %203 = vector.broadcast %c-100_i32 : i32 to vector<16x1xi32>
    %204 = arith.cmpi ne, %7, %203 : vector<16x1xi32>
    %205 = arith.extui %204 : vector<16x1xi1> to vector<16x1xi32>
    %206 = arith.sitofp %205 : vector<16x1xi32> to vector<16x1xf32>
    %207 = arith.mulf %8, %206 : vector<16x1xf32>
    %208 = arith.subf %194, %202 : vector<16x1xf32>
    %209 = arith.mulf %208, %207 : vector<16x1xf32>
    %210 = vector.shape_cast %209 : vector<16x1xf32> to vector<1x16x1xf32>
    %cst_44 = arith.constant dense<0.000000e+00> : vector<1xf32>
    %211 = vector.multi_reduction <add>, %210, %cst_44 [1, 2] : vector<1x16x1xf32> to vector<1xf32>
    %212 = vector.shape_cast %211 : vector<1xf32> to vector<1x1x1xf32>
    %213 = vector.extract %212[0, 0, 0] : f32 from vector<1x1x1xf32>
    %214 = vector.broadcast %213 : f32 to vector<1x1xf32>
    %215 = vector.shape_cast %207 : vector<16x1xf32> to vector<1x16x1xf32>
    %cst_45 = arith.constant dense<0.000000e+00> : vector<1xf32>
    %216 = vector.multi_reduction <add>, %215, %cst_45 [1, 2] : vector<1x16x1xf32> to vector<1xf32>
    %217 = vector.shape_cast %216 : vector<1xf32> to vector<1x1x1xf32>
    %218 = vector.extract %217[0, 0, 0] : f32 from vector<1x1x1xf32>
    %219 = vector.broadcast %218 : f32 to vector<1x1xf32>
    %cst_46 = arith.constant 1.000000e+00 : f32
    %220 = vector.broadcast %cst_46 : f32 to vector<1x1xf32>
    %221 = arith.maximumf %219, %220 : vector<1x1xf32>
    %222 = arith.divf %214, %221 : vector<1x1xf32>
    %cst_47 = arith.constant 2.000000e+00 : f32
    %223 = vector.broadcast %cst_47 : f32 to vector<1x1xf32>
    %224 = arith.mulf %223, %222 : vector<1x1xf32>
    %225 = arith.addf %185, %224 : vector<1x1xf32>
    %cst_48 = arith.constant 0.000000e+00 : f32
    %226 = vector.broadcast %cst_48 : f32 to vector<16x128xf32>
    %c0_49 = arith.constant 0 : index
    %c0_50 = arith.constant 0 : index
    %227 = vector.load %arg4[%c0_49, %c0_50] : memref<16x128xf32, #tpu.memory_space<vmem>>, vector<16x128xf32>
    tpu.vector_store %arg4[%c0_49, %c0_50], %226 {strides = array<i32>} : memref<16x128xf32, #tpu.memory_space<vmem>>, vector<16x128xf32>,
    %c0_51 = arith.constant 0 : index
    %c0_52 = arith.constant 0 : index
    %228 = vector.load %arg4[%c0_51, %c0_52] : memref<16x128xf32, #tpu.memory_space<vmem>>, vector<16x16xf32>
    tpu.vector_store %arg4[%c0_51, %c0_52], %149 {strides = array<i32>} : memref<16x128xf32, #tpu.memory_space<vmem>>, vector<16x16xf32>,
    %c0_53 = arith.constant 0 : index
    %c16 = arith.constant 16 : index
    %229 = vector.load %arg4[%c0_53, %c16] : memref<16x128xf32, #tpu.memory_space<vmem>>, vector<2x8xf32>
    tpu.vector_store %arg4[%c0_53, %c16], %160 {strides = array<i32>} : memref<16x128xf32, #tpu.memory_space<vmem>>, vector<2x8xf32>,
    %c0_54 = arith.constant 0 : index
    %c24 = arith.constant 24 : index
    %230 = vector.load %arg4[%c0_54, %c24] : memref<16x128xf32, #tpu.memory_space<vmem>>, vector<1x1xf32>
    tpu.vector_store %arg4[%c0_54, %c24], %225 {strides = array<i32>} : memref<16x128xf32, #tpu.memory_space<vmem>>, vector<1x1xf32>,
    return
  }
}

</mosaic_0001>

<bundles_post_ra>
// kernel: joint_forward.1
= control target key start
LH: loop header
LB: loop body
LE: loop exit
PB: predicated region body
PF: predicated region fallthrough
CT: control target
= control target key end

     0   :  { %vm57_vm0 = vcmask 261120   ;;  %v1119_v8 = vmov 0.0   ;;  %vm1120_vm1 = vmmov 0   ;;  %v89_v23 = vlaneseq  ;;  %s1121_s25 = smov 96   ;;  %s1124_s21 = smov 112   ;;  %s1400_s0 = inlined_call_operand.vmem [shape: f32[16,256], index: 0, kind: input, shape index: {}]   ;;  %s1401_s1 = inlined_call_operand.vmem [shape: bf16[32,640], index: 1, kind: input, shape index: {}]   ;;  %s1402_s3 = inlined_call_operand.vmem [shape: f32[8,640], index: 3, kind: input, shape index: {}]   ;;  %s1403_s2 = inlined_call_operand.vmem [shape: bf16[128,32], index: 2, kind: input, shape index: {}]   ;;  %s1404_s4 = inlined_call_operand.vmem [shape: f32[16,128], index: 4, kind: output, shape index: {}]  }
   0x1   :  { %v51_v0 = vld [vmem:[%s1400_s0] sm:$0xff]  ;;  %v53_v1 = vld [vmem:[%s1400_s0 + $0x10] sm:$0xff]  ;;  %957 = vmatprep.subr.bf16.mxu0 %v1119_v8  ;;  %961 = vmatprep.mubr.msk.bf16.mxu0 %vm1120_vm1, %v1119_v8  ;;  %v1060_v10 = vld [vmem:[%s1401_s1 + $0x28] ss:$20 sps:$4 sm:$0xff]   ;;  %vm217_vm2 = vcmask 130048   ;;  %883 = vst [vmem:[%s1404_s4] sm:$0xff] %v1119_v8  ;;  %vm666_vm3 = vcmask 1040384  }
   0x2   :  { %v58_v2 = vsel %vm57_vm0, %v51_v0, 0.0  ;;  %v67_v3 = vmul.f32 %v51_v0, %v51_v0  ;;  %v68_v4 = vmul.f32 %v53_v1, %v53_v1  ;;  %v61_v6 = vsel %vm57_vm0, %v53_v1, 0.0  ;;  %v1057_v9 = vld [vmem:[%s1401_s1] ss:$20 sps:$4 sm:$0xff]   ;;  %965 = vmatprep.subr.bf16.mxu1 %v1119_v8  ;;  %967 = vmatprep.mubr.msk.bf16.mxu1 %vm1120_vm1, %v1119_v8  ;;  %v1059_v54 = vld [vmem:[%s1401_s1 + $0x4] ss:$20 sps:$4 sm:$0xff]  }
   0x3   :  { %59 = vadd.xlane.f32.xlu0 %v58_v2  ;;  %958 = vmatpush3.bf16.msra.mxu0 %v1057_v9  ;;  %v1179_v26 = vshrl.u32 %v89_v23, 7  ;;  %v1185_v28 = vld [vmem:[%s1402_s3] sm:$0xff]  ;;  %v1220_v57 = vld [vmem:[%s1400_s0 + $0x8] sm:$0xff]  ;;  %v1225_v61 = vld [vmem:[%s1400_s0 + $0x18] sm:$0xff]  ;;  %s1122_s0 = smov 64   ;;  %884 = vst [vmem:[%s1404_s4 + $0x8] sm:$0xff] %v1119_v8 }
   0x4   :  { %v69_v5 = vsel %vm57_vm0, %v67_v3, 0.0  ;;  %v72_v7 = vsel %vm57_vm0, %v68_v4, 0.0  ;;  %959 = vmatprep.subr.bf16.mxu0 %v1119_v8  ;;  %v1062_v55 = vld [vmem:[%s1401_s1 + $0x2c] ss:$20 sps:$4 sm:$0xff]   ;;  %s1125_s22 = smov 1   ;;  %vm732_vm8 = vcmask 58368  }
   0x5   :  { %70 = vadd.xlane.f32.xlu1 %v69_v5  ;;  %v91_v27 = vsub.s32 1, %v1179_v26  ;;  %v97_v33 = vsub.s32 2, %v1179_v26  ;;  %v1200_v43 = vsub.s32 0, %v1179_v26  ;;  %vm843_vm10 = vcmask 7168  }
   0x6   :  { %vm758_vm11 = vcmask 1024   ;;  %vm891_vm12 = vcmask 189568   ;;  %vm893_vm13 = vcmask 196800  }
   0x7   :  { %62 = vadd.xlane.f32.xlu0 %v61_v6  ;;  %960 = vmatpush3.bf16.msra.mxu0 %v1060_v10  ;;  %v92_v32 = vrot.slane %v1185_v28, %v91_v27  ;;  %v98_v38 = vrot.slane %v1185_v28, %v97_v33  ;;  %v105_v44 = vrot.slane %v1185_v28, %v1200_v43 }
   0x8   :  { %971 = vmatprep.subr.bf16.mxu0 %v1119_v8 }
   0x9   :  { %73 = vadd.xlane.f32.xlu1 %v72_v7 }
  0x90   :  { %v60_v11 = vpop.xlane.xlu0 %59 }
  0x91   :  { %v65_v12 = vmul.f32 0.03125, %v60_v11 }
  0x92   :  { %v71_v13 = vpop.xlane.xlu1 %70 }
  0x93   :  { %v77_v14 = vmul.f32 %v65_v12, %v65_v12  ;;  %v75_v15 = vmul.f32 0.03125, %v71_v13  ;;  %v81_v29 = vsub.f32 %v51_v0, %v65_v12 }
  0x94   :  { %v63_v16 = vpop.xlane.xlu0 %62 }
  0x95   :  { %v79_v17 = vsub.f32 %v75_v15, %v77_v14  ;;  %v66_v18 = vmul.f32 0.03125, %v63_v16 }
  0x96   :  { %v74_v19 = vpop.xlane.xlu1 %73 }
  0x97   :  { %v83_v20 = vadd.f32 1e-12, %v79_v17  ;;  %v78_v21 = vmul.f32 %v66_v18, %v66_v18  ;;  %v76_v22 = vmul.f32 0.03125, %v74_v19  ;;  %v82_v34 = vsub.f32 %v53_v1, %v66_v18 }
  0x99   :  { %1079 = vrsqrt.f32 %v83_v20  ;;  %v80_v24 = vsub.f32 %v76_v22, %v78_v21 }
  0x9b   :  { %v84_v25 = vadd.f32 1e-12, %v80_v24 }
  0x9d   :  { %1081 = vrsqrt.f32 %v84_v25 }
  0xa3   :  { %v1080_v30 = vpop.eup %1079 }
  0xa4   :  { %v87_v31 = vmul.f32 %v1080_v30, %v81_v29 }
  0xa6   :  { %v93_v37 = vmul.f32 %v92_v32, %v87_v31  ;;  %v47_v31 = vld [vmem:[%s1402_s3 + $0x8] sm:$0xff] }
  0xa7   :  { %v1082_v35 = vpop.eup %1081 }
  0xa8   :  { %v88_v36 = vmul.f32 %v1082_v35, %v82_v34  ;;  %v1190_v40 = vadd.f32 %v98_v38, %v93_v37 }
  0xaa   :  { %v94_v39 = vmul.f32 %v92_v32, %v88_v36  ;;  %v292_v32 = vrot.slane %v47_v31, %v1200_v43 }
  0xac   :  { %v1192_v41 = vadd.f32 %v98_v38, %v94_v39 }
  0xae   :  { %v101_v42 = vpack.c.bf16 %v1192_v41, %v1190_v40 }
  0xb0   :  { %962 = vmatmul.mubr.msk.bf16.vlgmr.msra.gmra.mrb[0].mxu0 %vm57_vm0, %v101_v42 }
  0xb1   :  { %973 = vmatprep.mubr.msk.bf16.mxu0 %vm1120_vm1, %v1119_v8 }
 0x183   :  { %v155_v45 = vpop.f32.mrb[0].mxu0 }
 0x184   :  { %v963_v46 = vpop.f32.mrb[1].mxu0  ;;  %v156_v48 = vadd.f32 %v155_v45, %v105_v44 }
 0x185   :  { %v158_v47 = vpop.f32.mrb[2].mxu0 }
 0x186   :  { %v159_v49 = vadd.f32 %v158_v47, %v105_v44  ;;  %v964_v50 = vpop.f32.mrb[3].mxu0 }
 0x188   :  { %v162_v51 = vpack.c.bf16 %v159_v49, %v156_v48 }
 0x18a   :  { %164 = vrot.lane.b32.xlu0 %v162_v51, %s1121_s25  ;;  %s1128_s25 = smov 16  }
 0x1fc   :  { %v165_v52 = vpop.permute.xlu0 %164 }
 0x1fd   :  { %v170_v53 = vsel %vm57_vm0, %v165_v52, 0 }
 0x1fe   :  { %966 = vmatpush3.bf16.xpose.msra.mxu1 %v170_v53 }
 0x1ff   :  { %977 = vmatprep.subr.bf16.mxu1 %v1119_v8 }
 0x205   :  { %968 = vmatmul.mubr.msk.bf16.vlgmr.msra.gmra.mrb[0].mxu1 %vm57_vm0, %v162_v51 }
 0x206   :  { %978 = vmatpush3.bf16.msra.mxu1 %v1059_v54  ;;  %981 = vmatprep.mubr.msk.bf16.mxu1 %vm1120_vm1, %v1119_v8 }
 0x207   :  { %979 = vmatprep.subr.bf16.mxu1 %v1119_v8 }
 0x20a   :  { %980 = vmatpush3.bf16.msra.mxu1 %v1062_v55 }
 0x20b   :  { %993 = vmatprep.subr.bf16.mxu1 %v1119_v8 }
 0x2d8   :  { %v206_v56 = vpop.f32.mrb[0].mxu1 }
 0x2d9   :  { %v213_v58 = vmul.f32 0.17677669, %v206_v56  ;;  %v969_v59 = vpop.f32.mrb[1].mxu1 }
 0x2da   :  { %v209_v60 = vpop.f32.mrb[2].mxu1 }
 0x2db   :  { %v214_v62 = vmul.f32 0.17677669, %v209_v60  ;;  %v970_v63 = vpop.f32.mrb[3].mxu1  ;;  %v215_v0 = vadd.f32 %v213_v58, %v1220_v57 }
 0x2dd   :  { %v218_v1 = vsel %vm217_vm2, %v215_v0, -inf  ;;  %v216_v2 = vadd.f32 %v214_v62, %v1225_v61 }
 0x2de   :  { %219 = vmax.xlane.f32.xlu1 %v218_v1 }
 0x2df   :  { %v221_v3 = vsel %vm217_vm2, %v216_v2, -inf }
 0x2e2   :  { %222 = vmax.xlane.f32.xlu1 %v221_v3 }
 0x36b   :  { %v220_v4 = vpop.xlane.xlu1 %219 }
 0x36c   :  { %v224_v5 = vsub.f32 %v215_v0, %v220_v4 }
 0x36e   :  { %v226_v6 = vmul.f32 1.442695, %v224_v5 }
 0x36f   :  { %v223_v7 = vpop.xlane.xlu1 %222 }
 0x370   :  { %1083 = vpow2.f32 %v226_v6  ;;  %v225_v9 = vsub.f32 %v216_v2, %v223_v7  ;;  %v379_v2 = vsub.s32 3, %v1179_v26  ;;  %v385_v7 = vsub.s32 4, %v1179_v26 }
 0x372   :  { %v228_v10 = vmul.f32 1.442695, %v225_v9  ;;  %v380_v6 = vrot.slane %v1185_v28, %v379_v2 }
 0x374   :  { %1085 = vpow2.f32 %v228_v10 }
 0x37a   :  { %v1084_v11 = vpop.eup %1083 }
 0x37b   :  { %v230_v12 = vsel %vm217_vm2, %v1084_v11, 0.0 }
 0x37c   :  { %231 = vadd.xlane.f32.xlu1 %v230_v12 }
 0x37e   :  { %v1086_v13 = vpop.eup %1085 }
 0x37f   :  { %v233_v14 = vsel %vm217_vm2, %v1086_v13, 0.0 }
 0x380   :  { %234 = vadd.xlane.f32.xlu1 %v233_v14 }
 0x391   :  { %241 = vrot.lane.b32.xlu1 %v162_v51, %s1122_s0 }
 0x409   :  { %v232_v15 = vpop.xlane.xlu1 %231 }
 0x40a   :  { %1087 = vrcp.f32 %v232_v15 }
 0x40d   :  { %v235_v16 = vpop.xlane.xlu1 %234 }
 0x40e   :  { %1089 = vrcp.f32 %v235_v16 }
 0x411   :  { %v242_v17 = vpop.permute.xlu1 %241 }
 0x412   :  { %972 = vmatpush3.bf16.msra.mxu0 %v242_v17 }
 0x413   :  { %985 = vmatprep.subr.bf16.mxu0 %v1119_v8 }
 0x414   :  { %v1088_v18 = vpop.eup %1087 }
 0x415   :  { %v238_v20 = vmul.f32 %v1088_v18, %v1084_v11  ;;  %v1067_v18 = vld [vmem:[%s1403_s2] sm:$0xff]  }
 0x418   :  { %v1090_v19 = vpop.eup %1089 }
 0x419   :  { %v239_v21 = vmul.f32 %v1090_v19, %v1086_v13  ;;  %v386_v13 = vrot.slane %v1185_v28, %v385_v7  ;;  %v1068_v19 = vld [vmem:[%s1403_s2 + $0x8] sm:$0xff]  }
 0x41b   :  { %v240_v22 = vpack.c.bf16 %v239_v21, %v238_v20  ;;  %v1069_v20 = vld [vmem:[%s1403_s2 + $0x10] sm:$0xff]   ;;  %v1070_v21 = vld [vmem:[%s1403_s2 + $0x18] sm:$0xff]  }
 0x41d   :  { %974 = vmatmul.mubr.msk.bf16.vlgmr.msra.gmra.mrb[4].mxu0 %vm217_vm2, %v240_v22  ;;  %v1071_v22 = vld [vmem:[%s1403_s2 + $0x20] sm:$0xff]  }
 0x41e   :  { %989 = vmatprep.mubr.msk.bf16.mxu0 %vm1120_vm1, %v1119_v8 }
 0x4f0   :  { %v281_v24 = vpop.f32.mrb[4].mxu0 }
 0x4f1   :  { %v975_v25 = vpop.f32.mrb[5].mxu0 }
 0x4f2   :  { %v284_v27 = vpop.f32.mrb[6].mxu0  ;;  %v1073_v25 = vld [vmem:[%s1403_s2 + $0x30] sm:$0xff]  }
 0x4f3   :  { %v288_v29 = vpack.c.bf16 %v284_v27, %v281_v24  ;;  %v976_v30 = vpop.f32.mrb[7].mxu0  ;;  %v1072_v24 = vld [vmem:[%s1403_s2 + $0x28] sm:$0xff]   ;;  %v1074_v27 = vld [vmem:[%s1403_s2 + $0x38] sm:$0xff]  }
 0x4f5   :  { %982 = vmatmul.mubr.msk.bf16.vlgmr.msra.gmra.mrb[4].mxu1 %vm57_vm0, %v288_v29  ;;  %v48_v29 = vld [vmem:[%s1402_s3 + $0x10] sm:$0xff] }
 0x4f6   :  { %1009 = vmatprep.mubr.msk.bf16.mxu1 %vm1120_vm1, %v1119_v8  ;;  %994 = vmatpush3.bf16.msra.mxu1 %v1067_v18  ;;  %v393_v30 = vrot.slane %v48_v29, %v1200_v43 }
 0x4f7   :  { %995 = vmatprep.subr.bf16.mxu1 %v1119_v8 }
 0x4fa   :  { %996 = vmatpush3.bf16.msra.mxu1 %v1068_v19 }
 0x4fb   :  { %997 = vmatprep.subr.bf16.mxu1 %v1119_v8 }
 0x4fe   :  { %998 = vmatpush3.bf16.msra.mxu1 %v1069_v20 }
 0x4ff   :  { %999 = vmatprep.subr.bf16.mxu1 %v1119_v8 }
 0x502   :  { %1000 = vmatpush3.bf16.msra.mxu1 %v1070_v21 }
 0x503   :  { %1001 = vmatprep.subr.bf16.mxu1 %v1119_v8 }
 0x506   :  { %1002 = vmatpush3.bf16.msra.mxu1 %v1071_v22 }
 0x507   :  { %1003 = vmatprep.subr.bf16.mxu1 %v1119_v8 }
 0x50a   :  { %1004 = vmatpush3.bf16.msra.mxu1 %v1072_v24 }
 0x50b   :  { %1005 = vmatprep.subr.bf16.mxu1 %v1119_v8 }
 0x50e   :  { %1006 = vmatpush3.bf16.msra.mxu1 %v1073_v25 }
 0x50f   :  { %1007 = vmatprep.subr.bf16.mxu1 %v1119_v8 }
 0x512   :  { %1008 = vmatpush3.bf16.msra.mxu1 %v1074_v27 }
 0x5c8   :  { %v338_v33 = vpop.f32.mrb[4].mxu1 }
 0x5c9   :  { %v339_v34 = vadd.f32 %v338_v33, %v292_v32  ;;  %v983_v35 = vpop.f32.mrb[5].mxu1 }
 0x5ca   :  { %v341_v36 = vpop.f32.mrb[6].mxu1 }
 0x5cb   :  { %v345_v37 = vadd.f32 %v339_v34, %v1190_v40  ;;  %v342_v38 = vadd.f32 %v341_v36, %v292_v32  ;;  %v984_v39 = vpop.f32.mrb[7].mxu1  ;;  %v1063_v40 = vld [vmem:[%s1401_s1 + $0x8] ss:$20 sps:$4 sm:$0xff]  }
 0x5cc   :  { %986 = vmatpush3.bf16.msra.mxu0 %v1063_v40 }
 0x5cd   :  { %v346_v42 = vadd.f32 %v342_v38, %v1192_v41  ;;  %v347_v44 = vsel %vm57_vm0, %v345_v37, 0.0  ;;  %v355_v45 = vmul.f32 %v345_v37, %v345_v37  ;;  %v1065_v41 = vld [vmem:[%s1401_s1 + $0x30] ss:$20 sps:$4 sm:$0xff]   ;;  %987 = vmatprep.subr.bf16.mxu0 %v1119_v8 }
 0x5ce   :  { %348 = vadd.xlane.f32.xlu0 %v347_v44 }
 0x5cf   :  { %v350_v46 = vsel %vm57_vm0, %v346_v42, 0.0  ;;  %v357_v47 = vsel %vm57_vm0, %v355_v45, 0.0  ;;  %v356_v48 = vmul.f32 %v346_v42, %v346_v42 }
 0x5d0   :  { %351 = vadd.xlane.f32.xlu1 %v350_v46  ;;  %988 = vmatpush3.bf16.msra.mxu0 %v1065_v41 }
 0x5d1   :  { %v360_v49 = vsel %vm57_vm0, %v356_v48, 0.0  ;;  %1013 = vmatprep.subr.bf16.mxu0 %v1119_v8 }
 0x5d2   :  { %358 = vadd.xlane.f32.xlu0 %v357_v47 }
 0x5d6   :  { %361 = vadd.xlane.f32.xlu0 %v360_v49 }
 0x65b   :  { %v349_v50 = vpop.xlane.xlu0 %348 }
 0x65c   :  { %v353_v51 = vmul.f32 0.03125, %v349_v50 }
 0x65d   :  { %v352_v52 = vpop.xlane.xlu1 %351 }
 0x65e   :  { %v365_v54 = vmul.f32 %v353_v51, %v353_v51  ;;  %v354_v55 = vmul.f32 0.03125, %v352_v52  ;;  %v369_v3 = vsub.f32 %v345_v37, %v353_v51 }
 0x65f   :  { %v359_v53 = vpop.xlane.xlu0 %358 }
 0x660   :  { %v363_v56 = vmul.f32 0.03125, %v359_v53  ;;  %v366_v60 = vmul.f32 %v354_v55, %v354_v55  ;;  %v370_v9 = vsub.f32 %v346_v42, %v354_v55 }
 0x662   :  { %v367_v58 = vsub.f32 %v363_v56, %v365_v54 }
 0x663   :  { %v362_v59 = vpop.xlane.xlu0 %361 }
 0x664   :  { %v371_v62 = vadd.f32 1e-12, %v367_v58  ;;  %v364_v63 = vmul.f32 0.03125, %v362_v59  ;;  %v471_v58 = vsub.s32 5, %v1179_v26 }
 0x666   :  { %1091 = vrsqrt.f32 %v371_v62  ;;  %v368_v0 = vsub.f32 %v364_v63, %v366_v60  ;;  %v472_v59 = vrot.slane %v1185_v28, %v471_v58 }
 0x668   :  { %v372_v1 = vadd.f32 1e-12, %v368_v0 }
 0x66a   :  { %1093 = vrsqrt.f32 %v372_v1 }
 0x670   :  { %v1092_v4 = vpop.eup %1091 }
 0x671   :  { %v375_v5 = vmul.f32 %v1092_v4, %v369_v3 }
 0x673   :  { %v381_v12 = vmul.f32 %v380_v6, %v375_v5 }
 0x674   :  { %v1094_v10 = vpop.eup %1093 }
 0x675   :  { %v376_v11 = vmul.f32 %v1094_v10, %v370_v9  ;;  %v1262_v15 = vadd.f32 %v386_v13, %v381_v12  ;;  %v1075_v12 = vld [vmem:[%s1401_s1 + $0xc] ss:$20 sps:$4 sm:$0xff]  }
 0x677   :  { %v382_v14 = vmul.f32 %v380_v6, %v376_v11 }
 0x679   :  { %v1264_v16 = vadd.f32 %v386_v13, %v382_v14  ;;  %v1076_v13 = vld [vmem:[%s1401_s1 + $0x34] ss:$20 sps:$4 sm:$0xff]  }
 0x67b   :  { %v389_v17 = vpack.c.bf16 %v1264_v16, %v1262_v15 }
 0x67d   :  { %990 = vmatmul.mubr.msk.bf16.vlgmr.msra.gmra.mrb[8].mxu0 %vm57_vm0, %v389_v17 }
 0x67e   :  { %1017 = vmatprep.mubr.msk.bf16.mxu0 %vm1120_vm1, %v1119_v8  ;;  %1014 = vmatpush3.bf16.msra.mxu0 %v1075_v12  ;;  %v1365_v12 = vand.u32 127, %v89_v23 }
 0x67f   :  { %1015 = vmatprep.subr.bf16.mxu0 %v1119_v8 }
 0x682   :  { %1016 = vmatpush3.bf16.msra.mxu0 %v1076_v13 }
 0x683   :  { %1021 = vmatprep.subr.bf16.mxu0 %v1119_v8 }
 0x750   :  { %v443_v31 = vpop.f32.mrb[8].mxu0 }
 0x751   :  { %v444_v32 = vadd.f32 %v443_v31, %v393_v30  ;;  %v991_v33 = vpop.f32.mrb[9].mxu0  ;;  %v596_v31 = vsub.s32 6, %v1179_v26 }
 0x752   :  { %v446_v34 = vpop.f32.mrb[10].mxu0  ;;  %v602_v33 = vsub.s32 7, %v1179_v26  ;;  %v1123_v26 = vmov 16  }
 0x753   :  { %v450_v35 = vmul.f32 %v444_v32, %v444_v32  ;;  %v447_v36 = vadd.f32 %v446_v34, %v393_v30  ;;  %v992_v37 = vpop.f32.mrb[11].mxu0  ;;  %1050 = vset.pattern.permute.xlu0 %v1123_v26  ;;  %1049 = vset.pattern.permute.xlu1 %v1123_v26 }
 0x755   :  { %v452_v38 = vmul.f32 %v450_v35, %v444_v32  ;;  %v451_v39 = vmul.f32 %v447_v36, %v447_v36 }
 0x757   :  { %v454_v42 = vmul.f32 0.044715, %v452_v38  ;;  %v453_v44 = vmul.f32 %v451_v39, %v447_v36  ;;  %v603_v39 = vrot.slane %v1185_v28, %v602_v33 }
 0x759   :  { %v456_v45 = vadd.f32 %v454_v42, %v444_v32  ;;  %v455_v46 = vmul.f32 0.044715, %v453_v44 }
 0x75b   :  { %v458_v47 = vmul.f32 0.7978846, %v456_v45  ;;  %v457_v48 = vadd.f32 %v455_v46, %v447_v36 }
 0x75d   :  { %1095 = vtanh.f32 %v458_v47  ;;  %v459_v49 = vmul.f32 0.7978846, %v457_v48 }
 0x75f   :  { %1097 = vtanh.f32 %v459_v49  ;;  %v1078_v49 = vld [vmem:[%s1401_s1 + $0x38] ss:$20 sps:$4 sm:$0xff]  }
 0x767   :  { %v1096_v40 = vpop.eup %1095 }
 0x768   :  { %v462_v41 = vadd.f32 1.0, %v1096_v40  ;;  %v49_v40 = vld [vmem:[%s1402_s3 + $0x18] sm:$0xff] }
 0x769   :  { %v1098_v50 = vpop.eup %1097 }
 0x76a   :  { %v464_v51 = vmul.f32 0.5, %v462_v41  ;;  %v463_v52 = vadd.f32 1.0, %v1098_v50  ;;  %v610_v41 = vrot.slane %v49_v40, %v1200_v43 }
 0x76c   :  { %v465_v53 = vmul.f32 0.5, %v463_v52  ;;  %v466_v54 = vmul.f32 %v464_v51, %v444_v32  ;;  %v597_v32 = vrot.slane %v1185_v28, %v596_v31  ;;  %v1077_v28 = vld [vmem:[%s1401_s1 + $0x10] ss:$20 sps:$4 sm:$0xff]  }
 0x76e   :  { %v467_v55 = vmul.f32 %v465_v53, %v447_v36 }
 0x770   :  { %v468_v56 = vpack.c.bf16 %v467_v55, %v466_v54 }
 0x772   :  { %1010 = vmatmul.mubr.bf16.vlgmr.msra.gmra.mrb[8].mxu1 %v468_v56 }
 0x845   :  { %v555_v60 = vpop.f32.mrb[8].mxu1 }
 0x846   :  { %v556_v62 = vadd.f32 %v555_v60, %v472_v59  ;;  %v1011_v63 = vpop.f32.mrb[9].mxu1 }
 0x847   :  { %v558_v0 = vpop.f32.mrb[10].mxu1  ;;  %v1029_v63 = vtrunc.f32 %v1220_v57 }
 0x848   :  { %v562_v1 = vadd.f32 %v556_v62, %v1262_v15  ;;  %v559_v2 = vadd.f32 %v558_v0, %v472_v59  ;;  %v1012_v3 = vpop.f32.mrb[11].mxu1  ;;  %v1031_v62 = vtrunc.f32 %v1225_v61 }
 0x849   :  { %v1360_v3 = vcvt.f32.s32 %v1029_v63 }
 0x84a   :  { %v563_v4 = vadd.f32 %v559_v2, %v1264_v16  ;;  %v564_v5 = vsel %vm57_vm0, %v562_v1, 0.0  ;;  %v572_v10 = vmul.f32 %v562_v1, %v562_v1  ;;  %v1032_v2 = vcvt.f32.s32 %v1031_v62 }
 0x84b   :  { %565 = vadd.xlane.f32.xlu0 %v564_v5  ;;  %vm815_vm6 = vcmp.ne.s32.totalorder %v1360_v3, 4294967196 }
 0x84c   :  { %v573_v6 = vmul.f32 %v563_v4, %v563_v4  ;;  %v567_v9 = vsel %vm57_vm0, %v563_v4, 0.0  ;;  %v574_v11 = vsel %vm57_vm0, %v572_v10, 0.0  ;;  %vm816_vm7 = vcmp.ne.s32.totalorder %v1032_v2, 4294967196 }
 0x84e   :  { %v577_v7 = vsel %vm57_vm0, %v573_v6, 0.0 }
 0x84f   :  { %578 = vadd.xlane.f32.xlu1 %v577_v7  ;;  %568 = vadd.xlane.f32.xlu0 %v567_v9 }
 0x853   :  { %575 = vadd.xlane.f32.xlu0 %v574_v11 }
 0x8d8   :  { %v566_v14 = vpop.xlane.xlu0 %565 }
 0x8d9   :  { %v570_v17 = vmul.f32 0.03125, %v566_v14 }
 0x8db   :  { %v582_v22 = vmul.f32 %v570_v17, %v570_v17  ;;  %v586_v36 = vsub.f32 %v562_v1, %v570_v17 }
 0x8dc   :  { %v579_v15 = vpop.xlane.xlu1 %578  ;;  %v569_v16 = vpop.xlane.xlu0 %568 }
 0x8dd   :  { %v571_v18 = vmul.f32 0.03125, %v569_v16  ;;  %v581_v19 = vmul.f32 0.03125, %v579_v15 }
 0x8df   :  { %v583_v20 = vmul.f32 %v571_v18, %v571_v18  ;;  %v587_v34 = vsub.f32 %v563_v4, %v571_v18 }
 0x8e0   :  { %v576_v21 = vpop.xlane.xlu0 %575 }
 0x8e1   :  { %v585_v24 = vsub.f32 %v581_v19, %v583_v20  ;;  %v580_v25 = vmul.f32 0.03125, %v576_v21 }
 0x8e3   :  { %v589_v27 = vadd.f32 1e-12, %v585_v24  ;;  %v584_v29 = vsub.f32 %v580_v25, %v582_v22  ;;  %v927_v25 = vsel %vm815_vm6, 1.0, %v1119_v8 }
 0x8e5   :  { %1099 = vrsqrt.f32 %v589_v27  ;;  %v588_v30 = vadd.f32 1e-12, %v584_v29  ;;  %v928_v27 = vsel %vm816_vm7, 1.0, %v1119_v8 }
 0x8e6   :  { %v1052_v29 = vpack.i.bf16 %v928_v27, %v927_v25 }
 0x8e7   :  { %1101 = vrsqrt.f32 %v588_v30  ;;  %v1126_v30 = vmov 18  }
 0x8ef   :  { %v1100_v35 = vpop.eup %1099 }
 0x8f0   :  { %v593_v37 = vmul.f32 %v1100_v35, %v587_v34 }
 0x8f1   :  { %v1102_v38 = vpop.eup %1101 }
 0x8f2   :  { %v599_v42 = vmul.f32 %v597_v32, %v593_v37  ;;  %v592_v44 = vmul.f32 %v1102_v38, %v586_v36 }
 0x8f4   :  { %v598_v45 = vmul.f32 %v597_v32, %v592_v44  ;;  %v605_v46 = vadd.f32 %v603_v39, %v599_v42 }
 0x8f6   :  { %v604_v47 = vadd.f32 %v603_v39, %v598_v45  ;;  %v50_v39 = vld [vmem:[%s1402_s3 + $0x20] sm:$0xff]  ;;  %s1127_s3 = smov 111  }
 0x8f7   :  { %v673_v42 = vrot.slane %v50_v39, %v1200_v43 }
 0x8f8   :  { %v606_v48 = vpack.c.bf16 %v605_v46, %v604_v47 }
 0x8fa   :  { %1018 = vmatmul.mubr.msk.bf16.vlgmr.msra.gmra.mrb[12].mxu0 %vm57_vm0, %v606_v48 }
 0x8fb   :  { %1025 = vmatprep.mubr.msk.bf16.mxu0 %vm1120_vm1, %v1119_v8  ;;  %1022 = vmatpush3.bf16.msra.mxu0 %v1077_v28 }
 0x8fc   :  { %1023 = vmatprep.subr.bf16.mxu0 %v1119_v8 }
 0x8ff   :  { %1024 = vmatpush3.bf16.msra.mxu0 %v1078_v49 }
 0x9cd   :  { %v656_v50 = vpop.f32.mrb[12].mxu0 }
 0x9ce   :  { %v657_v51 = vadd.f32 %v656_v50, %v610_v41  ;;  %v1019_v52 = vpop.f32.mrb[13].mxu0 }
 0x9cf   :  { %v659_v53 = vpop.f32.mrb[14].mxu0 }
 0x9d0   :  { %v660_v54 = vadd.f32 %v659_v53, %v610_v41  ;;  %v1020_v55 = vpop.f32.mrb[15].mxu0  ;;  %v771_v56 = vsel %vm217_vm2, %v657_v51, -inf  ;;  %885 = vst.msk [vmem:[%s1404_s4] sm:$0xff] %vm217_vm2, %v657_v51 }
 0x9d1   :  { %772 = vmax.xlane.f32.xlu1 %v771_v56 }
 0x9d2   :  { %v664_v58 = vrot.slane %v660_v54, 7  ;;  %886 = vst.msk [vmem:[%s1404_s4 + $0x8] sm:$0xff] %vm217_vm2, %v660_v54  ;;  %v774_v59 = vsel %vm217_vm2, %v660_v54, -inf }
 0x9d4   :  { %v667_v60 = vsel %vm666_vm3, %v657_v51, %v664_v58 }
 0x9d5   :  { %775 = vmax.xlane.f32.xlu1 %v774_v59  ;;  %1103 = vtanh.f32 %v667_v60 }
 0x9df   :  { %v1104_v0 = vpop.eup %1103 }
 0x9e0   :  { %v669_v1 = vpack.c.bf16 %v1104_v0, %v1104_v0 }
 0x9e2   :  { %675 = vrot.lane.b32.xlu0 %v669_v1, %s1124_s21 }
 0x9e6   :  { %799 = vperm.xlu0 %1050, %v1032_v2   ;;  %796 = vperm.xlu1 %1049, %v1360_v3  }
 0x9ea   :  { %1051 = vset.pattern.permute.xlu1 %v1126_v30 }
 0xa54   :  { %v676_v4 = vpop.permute.xlu0 %675 }
 0xa55   :  { %1026 = vmatmul.mubr.msk.bf16.vlgmr.msra.gmra.mrb[16].mxu0 %vm57_vm0, %v676_v4 }
 0xa5e   :  { %v773_v5 = vpop.xlane.xlu1 %772 }
 0xa5f   :  { %v777_v6 = vsub.f32 %v657_v51, %v773_v5 }
 0xa61   :  { %v779_v7 = vmul.f32 1.442695, %v777_v6 }
 0xa62   :  { %v776_v9 = vpop.xlane.xlu1 %775 }
 0xa63   :  { %1105 = vpow2.f32 %v779_v7  ;;  %v778_v10 = vsub.f32 %v660_v54, %v776_v9 }
 0xa65   :  { %v781_v11 = vmul.f32 1.442695, %v778_v10  ;;  %v800_v15 = vpop.permute.xlu0 %799 }
 0xa66   :  { %v797_v13 = vpop.permute.xlu1 %796  ;;  %vm802_vm5 = vcmp.eq.s32.totalorder %v1365_v12, %v800_v15 }
 0xa67   :  { %1107 = vpow2.f32 %v781_v11  ;;  %vm801_vm4 = vcmp.eq.s32.totalorder %v1365_v12, %v797_v13  ;;  %v926_v21 = vsel %vm802_vm5, 1.0, %v1119_v8 }
 0xa68   :  { %v925_v17 = vsel %vm801_vm4, 1.0, %v1119_v8  ;;  %v808_v22 = vmul.f32 %v926_v21, %v660_v54 }
 0xa69   :  { %v807_v20 = vmul.f32 %v925_v17, %v657_v51 }
 0xa6a   :  { %v812_v24 = vsel %vm217_vm2, %v808_v22, 0.0 }
 0xa6b   :  { %v809_v23 = vsel %vm217_vm2, %v807_v20, 0.0 }
 0xa6d   :  { %v1106_v14 = vpop.eup %1105 }
 0xa6e   :  { %v783_v16 = vsel %vm217_vm2, %v1106_v14, 0.0 }
 0xa6f   :  { %784 = vadd.xlane.f32.xlu0 %v783_v16 }
 0xa71   :  { %v1108_v18 = vpop.eup %1107 }
 0xa72   :  { %v786_v19 = vsel %vm217_vm2, %v1108_v18, 0.0 }
 0xa73   :  { %787 = vadd.xlane.f32.xlu0 %v786_v19 }
 0xa77   :  { %810 = vadd.xlane.f32.xlu0 %v809_v23 }
 0xa7b   :  { %813 = vadd.xlane.f32.xlu0 %v812_v24 }
 0xa91   :  { %1053 = vrot.lane.b32.xlu0 %v1052_v29, %s1125_s22 }
 0xafc   :  { %v785_v31 = vpop.xlane.xlu0 %784 }
 0xb00   :  { %v788_v32 = vpop.xlane.xlu0 %787 }
 0xb01   :  { %1109 = vlog2.f32 %v788_v32 }
 0xb02   :  { %1111 = vlog2.f32 %v785_v31 }
 0xb04   :  { %v811_v33 = vpop.xlane.xlu0 %810 }
 0xb08   :  { %v814_v37 = vpop.xlane.xlu0 %813 }
 0xb0b   :  { %v1110_v34 = vpop.eup %1109 }
 0xb0c   :  { %v792_v35 = vmul.f32 0.6931472, %v1110_v34  ;;  %v1112_v28 = vpop.eup %1111  ;;  %v1054_v49 = vpop.permute.xlu0 %1053 }
 0xb0d   :  { %v790_v40 = vmul.f32 0.6931472, %v1112_v28  ;;  %v1055_v41 = vunpack.i.l.bf16 %v1054_v49  ;;  %v1056_v63 = vunpack.i.h.bf16 %v1054_v49 }
 0xb0e   :  { %v794_v36 = vadd.f32 %v792_v35, %v776_v9 }
 0xb0f   :  { %v793_v50 = vadd.f32 %v790_v40, %v773_v5  ;;  %v829_v51 = vmul.f32 %v1055_v41, %v1220_v57  ;;  %v830_v0 = vmul.f32 %v1056_v63, %v1225_v61 }
 0xb10   :  { %v832_v38 = vsub.f32 %v794_v36, %v814_v37 }
 0xb11   :  { %v831_v52 = vsub.f32 %v793_v50, %v811_v33 }
 0xb12   :  { %v834_v1 = vmul.f32 %v832_v38, %v830_v0 }
 0xb13   :  { %v833_v43 = vmul.f32 %v831_v52, %v829_v51 }
 0xb28   :  { %v726_v44 = vpop.f32.mrb[16].mxu0 }
 0xb29   :  { %v727_v45 = vadd.f32 %v726_v44, %v673_v42  ;;  %v1027_v46 = vpop.f32.mrb[17].mxu0 }
 0xb2a   :  { %v729_v47 = vpop.f32.mrb[18].mxu0 }
 0xb2b   :  { %v1028_v48 = vpop.f32.mrb[19].mxu0  ;;  %v733_v26 = vsel %vm732_vm8, %v727_v45, -inf }
 0xb2c   :  { %734 = vmax.xlane.f32.xlu1 %v733_v26 }
 0xb3d   :  { %748 = vperm.xlu1 %1051, %v1360_v3  }
 0xb41   :  { %837 = vrot.lane.b32.xlu1 %v833_v43, %s1127_s3 }
 0xb45   :  { %859 = vrot.lane.b32.xlu1 %v829_v51, %s1127_s3 }
 0xbb9   :  { %v735_v53 = vpop.xlane.xlu1 %734 }
 0xbba   :  { %v736_v54 = vsub.f32 %v727_v45, %v735_v53 }
 0xbbc   :  { %v737_v55 = vmul.f32 1.442695, %v736_v54 }
 0xbbd   :  { %v749_v56 = vpop.permute.xlu1 %748 }
 0xbbe   :  { %1113 = vpow2.f32 %v737_v55  ;;  %vm750_vm9 = vcmp.eq.s32.totalorder %v1365_v12, %v749_v56 }
 0xbbf   :  { %v924_v58 = vsel %vm750_vm9, 1.0, %v1119_v8 }
 0xbc0   :  { %v753_v59 = vmul.f32 %v924_v58, %v727_v45 }
 0xbc1   :  { %v838_v2 = vpop.permute.xlu1 %837 }
 0xbc2   :  { %v754_v60 = vsel %vm732_vm8, %v753_v59, 0.0  ;;  %v844_v8 = vsel %vm843_vm10, %v838_v2, 0.0 }
 0xbc3   :  { %755 = vadd.xlane.f32.xlu0 %v754_v60 }
 0xbc5   :  { %v860_v4 = vpop.permute.xlu1 %859 }
 0xbc6   :  { %v865_v16 = vsel %vm843_vm10, %v860_v4, 0.0 }
 0xbc8   :  { %v1114_v57 = vpop.eup %1113 }
 0xbc9   :  { %v739_v62 = vsel %vm732_vm8, %v1114_v57, 0.0 }
 0xbca   :  { %740 = vadd.xlane.f32.xlu1 %v739_v62 }
 0xbd9   :  { %839 = vrot.lane.b32.xlu0 %v834_v1, %s1127_s3 }
 0xbdb   :  { %861 = vrot.lane.b32.xlu1 %v830_v0, %s1127_s3 }
 0xc50   :  { %v756_v3 = vpop.xlane.xlu0 %755 }
 0xc54   :  { %v840_v5 = vpop.permute.xlu0 %839 }
 0xc55   :  { %v845_v6 = vsel %vm843_vm10, %v840_v5, 0.0 }
 0xc56   :  { %v846_v7 = vadd.f32 %v845_v6, %v844_v8 }
 0xc57   :  { %v741_v9 = vpop.xlane.xlu1 %740 }
 0xc58   :  { %1115 = vlog2.f32 %v741_v9  ;;  %847 = vadd.xlane.f32.xlu0 %v846_v7 }
 0xc5b   :  { %v862_v61 = vpop.permute.xlu1 %861 }
 0xc5c   :  { %v866_v14 = vsel %vm843_vm10, %v862_v61, 0.0 }
 0xc5d   :  { %v867_v17 = vadd.f32 %v866_v14, %v865_v16 }
 0xc62   :  { %v1116_v10 = vpop.eup %1115 }
 0xc63   :  { %v743_v11 = vmul.f32 0.6931472, %v1116_v10 }
 0xc65   :  { %v744_v12 = vadd.f32 %v743_v11, %v735_v53 }
 0xc67   :  { %v757_v13 = vsub.f32 %v744_v12, %v756_v3 }
 0xc69   :  { %v759_v15 = vsel %vm758_vm11, %v757_v13, 0.0 }
 0xc6a   :  { %760 = vadd.xlane.f32.xlu1 %v759_v15 }
 0xc6e   :  { %888 = vrot.lane.b32.xlu0 %v727_v45, %s1128_s25  ;;  %868 = vadd.xlane.f32.xlu1 %v867_v17 }
 0xce5   :  { %v848_v18 = vpop.xlane.xlu0 %847 }
 0xce6   :  { %v849_v20 = vrot.slane %v848_v18, 4 }
 0xce8   :  { %v850_v21 = vadd.f32 %v849_v20, %v848_v18 }
 0xce9   :  { %v889_v19 = vpop.permute.xlu0 %888 }
 0xcea   :  { %892 = vst.msk [vmem:[%s1404_s4] sm:$0x3] %vm891_vm12, %v889_v19  ;;  %v851_v23 = vrot.slane %v850_v21, 2 }
 0xcec   :  { %v852_v29 = vadd.f32 %v851_v23, %v850_v21 }
 0xcee   :  { %v853_v34 = vrot.slane %v852_v29, 1 }
 0xcf0   :  { %v854_v39 = vadd.f32 %v853_v34, %v852_v29 }
 0xcf7   :  { %v761_v22 = vpop.xlane.xlu1 %760 }
 0xcf8   :  { %v762_v24 = vrot.slane %v761_v22, 4 }
 0xcfa   :  { %v763_v25 = vadd.f32 %v762_v24, %v761_v22 }
 0xcfb   :  { %v869_v27 = vpop.xlane.xlu1 %868 }
 0xcfc   :  { %v764_v30 = vrot.slane %v763_v25, 2  ;;  %v870_v31 = vrot.slane %v869_v27, 4 }
 0xcfe   :  { %v871_v32 = vadd.f32 %v870_v31, %v869_v27  ;;  %v765_v33 = vadd.f32 %v764_v30, %v763_v25 }
 0xd00   :  { %v872_v35 = vrot.slane %v871_v32, 2  ;;  %v766_v36 = vrot.slane %v765_v33, 1 }
 0xd02   :  { %v873_v37 = vadd.f32 %v872_v35, %v871_v32  ;;  %v767_v38 = vadd.f32 %v766_v36, %v765_v33 }
 0xd04   :  { %1033 = vpush %v767_v38  ;;  %v874_v42 = vrot.slane %v873_v37, 1 }
 0xd05   :  { %1035 = vpush %v854_v39 }
 0xd06   :  { %v875_v44 = vadd.f32 %v874_v42, %v873_v37 }
 0xd08   :  { %1037 = vpush %v875_v44 }
 0xd35   :  { %s1034_s28 = spop %1033 }
 0xd36   :  { %s1036_s29 = spop %1035  ;;  %v769_v48 = vstv %s1034_s28 }
 0xd37   :  { %v856_v26 = vstv %s1036_s29  ;;  %v770_v49 = vmul.f32 0.5, %v769_v48 }
 0xd39   :  { %s1038_s30 = spop %1037 }
 0xd3a   :  { %v877_v45 = vstv %s1038_s30 }
 0xd3b   :  { %v878_v46 = vmax.f32 %v877_v45, 1.0 }
 0xd3d   :  { %1117 = vrcp.f32 %v878_v46 }
 0xd47   :  { %v1118_v47 = vpop.eup %1117 }
 0xd48   :  { %v880_v28 = vmul.f32 %v1118_v47, %v856_v26 }
 0xd4a   :  { %v881_v40 = vmul.f32 2.0, %v880_v28 }
 0xd4c   :  { %v882_v41 = vadd.f32 %v881_v40, %v770_v49 }
 0xd4e   :  { %894 = vst.msk [vmem:[%s1404_s4] sm:$0x1] %vm893_vm13, %v882_v41 }

</bundles_post_ra>
